<compile_context>
chip_gen: v5e
topology: v5e:2x2
jax: 0.10.0
libtpu: 0.0.40
codegen_flags: <defaults>
</compile_context>

<pallas_src>
import functools

import jax
import jax.numpy as jnp
from jax.experimental import pallas as pl
from jax.experimental.pallas import tpu as pltpu

EPS = 1e-5
_VMEM_LIMIT = 32 * 1024 * 1024  # explicit scoped-VMEM budget; safe on v5e/v6e/v7x
_MAX_BLOCK_LANES = 64 * 1024    # ~2 MiB per f32 stream at 8 channels


def _rows_per_block(m, w):
    """Image rows (of the folded N*H axis) per grid block.

    Constraints: tm divides m and the block lane width tm*w is a multiple of
    128 (or a single block covers the whole array, which is exempt).  Prefer
    the largest block whose block count is even (>= 2) so the 'parallel' grid
    axis can shard across both v7x TensorCores, while keeping per-stream tiles
    a few MiB so double-buffered in/out tiles stay far inside the VMEM budget.
    """
    divisors = [t for t in range(1, m + 1) if m % t == 0]

    def ok(t):
        return (t * w) % 128 == 0 and t * w <= _MAX_BLOCK_LANES

    for t in sorted(divisors, reverse=True):          # largest block, even nblk
        if ok(t) and (m // t) % 2 == 0:
            return t
    for t in sorted(divisors, reverse=True):          # largest block, >= 2 blocks
        if ok(t) and (m // t) >= 2:
            return t
    for t in sorted(divisors, reverse=True):          # any aligned block
        if ok(t):
            return t
    return m  # single full-array block (block shape == full array -> exempt)


def _conv_stats_kernel(x_ref, w_ref, h_ref, s_ref, q_ref, *, kw, w_img, wo):
    """Conv (1,kw) VALID over a lane-dense (Cin, L) tile + BN partial sums.

    x_ref : (Cin, L)        L = rows_per_block * W; block starts on a row boundary
    w_ref : (kw, Cout, Cin) per-tap weight matrices
    h_ref : (Cout, L)       raw conv output; lanes with w >= wo zeroed
    s_ref : (1, Cout, 1)    partial sum   over valid lanes
    q_ref : (1, Cout, 1)    partial sumsq over valid lanes
    """
    x = x_ref[...]
    L = x.shape[1]
    cout = w_ref.shape[1]

    acc = jnp.dot(w_ref[0], x, preferred_element_type=jnp.float32)
    for k in range(1, kw):  # static unroll: lane roll (XLU) + lane-dense MXU dot
        tap = pltpu.roll(x, (L - k) % L, 1)          # tap[:, p] = x[:, p + k]
        acc = acc + jnp.dot(w_ref[k], tap, preferred_element_type=jnp.float32)

    # In-kernel w-coordinate mask: block starts on an image-row boundary, so
    # lane % W is the exact w coordinate.  Zeroing row-crossing windows keeps
    # the bulk BatchNorm reductions exact.
    lane = jax.lax.broadcasted_iota(jnp.int32, acc.shape, 1)
    acc = jnp.where(lane % w_img < wo, acc, 0.0)

    h_ref[...] = acc  # single full-block, unmasked lane-dense store
    s_ref[...] = jnp.sum(acc, axis=1, keepdims=True).reshape(1, cout, 1)
    q_ref[...] = jnp.sum(acc * acc, axis=1, keepdims=True).reshape(1, cout, 1)


def _bn_relu_conv_stats_kernel(h_ref, scale_ref, shift_ref, w_ref,
                               o_ref, s_ref, q_ref, *, kw, w_img, wo):
    """BatchNorm(+affine)+ReLU fused on the fly into the second conv, plus
    per-block partial sums for the second BatchNorm."""
    y = jnp.maximum(h_ref[...] * scale_ref[...] + shift_ref[...], 0.0)  # (Cmid, L)
    L = y.shape[1]
    cout = w_ref.shape[1]

    acc = jnp.dot(w_ref[0], y, preferred_element_type=jnp.float32)
    for k in range(1, kw):
        tap = pltpu.roll(y, (L - k) % L, 1)
        acc = acc + jnp.dot(w_ref[k], tap, preferred_element_type=jnp.float32)

    lane = jax.lax.broadcasted_iota(jnp.int32, acc.shape, 1)
    acc = jnp.where(lane % w_img < wo, acc, 0.0)

    o_ref[...] = acc
    s_ref[...] = jnp.sum(acc, axis=1, keepdims=True).reshape(1, cout, 1)
    q_ref[...] = jnp.sum(acc * acc, axis=1, keepdims=True).reshape(1, cout, 1)


def _bn_scale_shift(part_sum, part_sumsq, count, gamma, beta):
    """Fold per-block partial sums into training-mode BatchNorm scale/shift.

    Reduced with the *global* valid-element count, so tiling over rows never
    corrupts the statistics.  Variance clamped at 0 against f32 cancellation.
    """
    total = jnp.sum(part_sum, axis=(0, 2))
    total_sq = jnp.sum(part_sumsq, axis=(0, 2))
    mean = total / count
    var = jnp.maximum(total_sq / count - mean * mean, 0.0)  # biased variance
    inv = gamma * jax.lax.rsqrt(var + EPS)
    scale = inv.reshape(-1, 1)                    # (C, 1): lane-broadcast in kernel
    shift = (beta - mean * inv).reshape(-1, 1)
    return scale, shift


@jax.jit
def conv_block_pallas(x_nchw, w1_oihw, g1, b1, w2_oihw, g2, b2):
    """x_nchw: (N, Cin, H, W) f32; w*_oihw: PyTorch Conv2d weights (O, I, 1, KW)."""
    N, Cin, H, W = x_nchw.shape
    Cmid = w1_oihw.shape[0]
    Cout = w2_oihw.shape[0]
    KW = w1_oihw.shape[3]
    Wo1 = W - (KW - 1)
    Wo2 = Wo1 - (KW - 1)
    assert Wo2 > 0
    M = N * H
    P = M * W

    tm = _rows_per_block(M, W)
    nblk = M // tm
    L = tm * W
    # Blocks are whole image rows -> (1,KW) conv windows never cross a block.
    assert (L % 128 == 0) or (nblk == 1)

    # Layout glue: channels on sublanes, flattened (N*H*W) spatial on lanes.
    x_cp = jnp.transpose(x_nchw, (1, 0, 2, 3)).reshape(Cin, P)
    # Per-tap weight matrices: (O, I, 1, KW) -> (KW, O, I).
    w1_k = jnp.transpose(w1_oihw[:, :, 0, :], (2, 0, 1))   # (KW, Cmid, Cin)
    w2_k = jnp.transpose(w2_oihw[:, :, 0, :], (2, 0, 1))   # (KW, Cout, Cmid)

    cparams = pltpu.CompilerParams(
        dimension_semantics=("parallel",),  # independent row blocks -> megacore on v7x
        vmem_limit_bytes=_VMEM_LIMIT,
    )

    def lane_spec(c):
        return pl.BlockSpec((c, L), lambda i: (0, i))

    def full_spec(r, c):
        return pl.BlockSpec((r, c), lambda i: (0, 0))

    def stat_spec(c):
        return pl.BlockSpec((1, c, 1), lambda i: (i, 0, 0))

    # ---- Pass 1: conv1 + per-block BN1 partial statistics --------------------
    h1, s1, q1 = pl.pallas_call(
        functools.partial(_conv_stats_kernel, kw=KW, w_img=W, wo=Wo1),
        grid=(nblk,),
        in_specs=[lane_spec(Cin), full_spec(KW, Cmid)
                  if False else pl.BlockSpec((KW, Cmid, Cin), lambda i: (0, 0, 0))],
        out_specs=(lane_spec(Cmid), stat_spec(Cmid), stat_spec(Cmid)),
        out_shape=(
            jax.ShapeDtypeStruct((Cmid, P), jnp.float32),
            jax.ShapeDtypeStruct((nblk, Cmid, 1), jnp.float32),
            jax.ShapeDtypeStruct((nblk, Cmid, 1), jnp.float32),
        ),
        compiler_params=cparams,
    )(x_cp, w1_k)

    scale1, shift1 = _bn_scale_shift(s1, q1, float(M * Wo1), g1, b1)

    # ---- Pass 2: BN1+ReLU fused into conv2 + per-block BN2 partials ----------
    h2, s2, q2 = pl.pallas_call(
        functools.partial(_bn_relu_conv_stats_kernel, kw=KW, w_img=W, wo=Wo2),
        grid=(nblk,),
        in_specs=[lane_spec(Cmid), full_spec(Cmid, 1), full_spec(Cmid, 1),
                  pl.BlockSpec((KW, Cout, Cmid), lambda i: (0, 0, 0))],
        out_specs=(lane_spec(Cout), stat_spec(Cout), stat_spec(Cout)),
        out_shape=(
            jax.ShapeDtypeStruct((Cout, P), jnp.float32),
            jax.ShapeDtypeStruct((nblk, Cout, 1), jnp.float32),
            jax.ShapeDtypeStruct((nblk, Cout, 1), jnp.float32),
        ),
        compiler_params=cparams,
    )(h1, scale1, shift1, w2_k)

    scale2, shift2 = _bn_scale_shift(s2, q2, float(M * Wo2), g2, b2)

    # ---- Final BN2+ReLU: trivial elementwise -> left to XLA, fused with the
    # reshape / :Wo2 slice / transpose epilogue (former Pallas pass 3 removed).
    # TODO(synk): optionally fuse both passes + epilogue into one pallas_call
    # holding h1/h2 in VMEM scratch when the whole activation fits (~<=40 MiB
    # on v7x, ~<=100 MiB on v5e/v6e) to drop two HBM round trips.
    out = jnp.maximum(h2 * scale2 + shift2, 0.0)                 # (Cout, P)
    out = out.reshape(Cout, N, H, W)[:, :, :, :Wo2]
    return jnp.transpose(out, (1, 0, 2, 3))                      # (N, Cout, H, Wo2)


def conv_block_reference(x_nchw, w1_oihw, g1, b1, w2_oihw, g2, b2):
    """Pure-JAX reference matching the PyTorch training-mode forward."""
    def conv(x, w):
        return jax.lax.conv_general_dilated(
            x, w, window_strides=(1, 1), padding="VALID",
            dimension_numbers=("NCHW", "OIHW", "NCHW"))

    def bn_relu(x, g, b):
        mean = jnp.mean(x, axis=(0, 2, 3), keepdims=True)
        var = jnp.mean((x - mean) ** 2, axis=(0, 2, 3), keepdims=True)
        y = (x - mean) * jax.lax.rsqrt(var + EPS)
        y = y * g.reshape(1, -1, 1, 1) + b.reshape(1, -1, 1, 1)
        return jnp.maximum(y, 0.0)

    h = bn_relu(conv(x_nchw, w1_oihw), g1, b1)
    return bn_relu(conv(h, w2_oihw), g2, b2)


if __name__ == "__main__":
    # Small shapes: batch=2, in_channels=4, out_channels=8, spatial 16x16.
    N, Cin, H, W = 2, 4, 16, 16
    Cout = 8
    KW = 3

    key = jax.random.PRNGKey(0)
    kx, kw1, kw2, kg1, kb1, kg2, kb2 = jax.random.split(key, 7)

    x = jax.random.normal(kx, (N, Cin, H, W), jnp.float32)
    # Deterministic synthetic parameters (same shapes as the PyTorch module's params).
    w1 = jax.random.normal(kw1, (Cout, Cin, 1, KW), jnp.float32) * 0.2   # conv1.weight
    w2 = jax.random.normal(kw2, (Cout, Cout, 1, KW), jnp.float32) * 0.2  # conv2.weight
    g1 = 1.0 + 0.1 * jax.random.normal(kg1, (Cout,), jnp.float32)        # bn1.weight
    b1 = 0.1 * jax.random.normal(kb1, (Cout,), jnp.float32)              # bn1.bias
    g2 = 1.0 + 0.1 * jax.random.normal(kg2, (Cout,), jnp.float32)        # bn2.weight
    b2 = 0.1 * jax.random.normal(kb2, (Cout,), jnp.float32)              # bn2.bias

    y = conv_block_pallas(x, w1, g1, b1, w2, g2, b2)
    y = jax.block_until_ready(y)

    y_ref = conv_block_reference(x, w1, g1, b1, w2, g2, b2)
    assert y.shape == (N, Cout, H, W - 4), y.shape
    assert jnp.allclose(y, y_ref, rtol=1e-3, atol=1e-3), float(jnp.max(jnp.abs(y - y_ref)))

    print("KERNEL_OK")
</pallas_src>

<mosaic_0001>
module attributes {stable_mosaic.version = 11 : i64} {
  func.func @_conv_stats_kernel(%arg0: i32, %arg1: memref<4x256xf32, #tpu.memory_space<vmem>>, %arg2: memref<3x8x4xf32, #tpu.memory_space<vmem>>, %arg3: memref<8x256xf32, #tpu.memory_space<vmem>>, %arg4: memref<1x8x1xf32, #tpu.memory_space<vmem>>, %arg5: memref<1x8x1xf32, #tpu.memory_space<vmem>>) attributes {dimension_semantics = [#tpu.dimension_semantics<parallel>], iteration_bounds = array<i64: 2>, scalar_prefetch = 0 : i64, scratch_operands = 0 : i64, tpu.core_type = #tpu.core_type<tc>, window_params = [{transform_indices = @transform_0, window_bounds = array<i64: 4, 256>}, {pipeline_mode = #tpu.pipeline_mode<synchronous>, transform_indices = @transform_1, window_bounds = array<i64: 3, 8, 4>}, {transform_indices = @transform_2, window_bounds = array<i64: 8, 256>}, {transform_indices = @transform_3, window_bounds = array<i64: 1, 8, 1>}, {transform_indices = @transform_4, window_bounds = array<i64: 1, 8, 1>}]} {
    %c0 = arith.constant 0 : index
    %c0_0 = arith.constant 0 : index
    %0 = vector.load %arg1[%c0, %c0_0] : memref<4x256xf32, #tpu.memory_space<vmem>>, vector<4x256xf32>
    %c0_1 = arith.constant 0 : index
    %c0_2 = arith.constant 0 : index
    %c0_3 = arith.constant 0 : index
    %1 = vector.load %arg2[%c0_1, %c0_2, %c0_3] : memref<3x8x4xf32, #tpu.memory_space<vmem>>, vector<1x8x4xf32>
    %2 = vector.shape_cast %1 : vector<1x8x4xf32> to vector<8x4xf32>
    %cst = arith.constant dense<0.000000e+00> : vector<8x256xf32>
    %3 = tpu.matmul %2, %0, %cst {dimension_numbers = #tpu.dot_dimension_numbers<[1], [0], [0], [1], [0, 0, 1, 1], [], []>} : vector<8x4xf32>, vector<4x256xf32>, vector<8x256xf32> -> vector<8x256xf32>
    %c255_i32 = arith.constant 255 : i32
    %4 = tpu.dynamic_rotate %0 by %c255_i32 dim 1 : vector<4x256xf32>, i32 -> vector<4x256xf32>
    %c1 = arith.constant 1 : index
    %c0_4 = arith.constant 0 : index
    %c0_5 = arith.constant 0 : index
    %5 = vector.load %arg2[%c1, %c0_4, %c0_5] : memref<3x8x4xf32, #tpu.memory_space<vmem>>, vector<1x8x4xf32>
    %6 = vector.shape_cast %5 : vector<1x8x4xf32> to vector<8x4xf32>
    %cst_6 = arith.constant dense<0.000000e+00> : vector<8x256xf32>
    %7 = tpu.matmul %6, %4, %cst_6 {dimension_numbers = #tpu.dot_dimension_numbers<[1], [0], [0], [1], [0, 0, 1, 1], [], []>} : vector<8x4xf32>, vector<4x256xf32>, vector<8x256xf32> -> vector<8x256xf32>
    %8 = arith.addf %3, %7 : vector<8x256xf32>
    %c254_i32 = arith.constant 254 : i32
    %9 = tpu.dynamic_rotate %0 by %c254_i32 dim 1 : vector<4x256xf32>, i32 -> vector<4x256xf32>
    %c2 = arith.constant 2 : index
    %c0_7 = arith.constant 0 : index
    %c0_8 = arith.constant 0 : index
    %10 = vector.load %arg2[%c2, %c0_7, %c0_8] : memref<3x8x4xf32, #tpu.memory_space<vmem>>, vector<1x8x4xf32>
    %11 = vector.shape_cast %10 : vector<1x8x4xf32> to vector<8x4xf32>
    %cst_9 = arith.constant dense<0.000000e+00> : vector<8x256xf32>
    %12 = tpu.matmul %11, %9, %cst_9 {dimension_numbers = #tpu.dot_dimension_numbers<[1], [0], [0], [1], [0, 0, 1, 1], [], []>} : vector<8x4xf32>, vector<4x256xf32>, vector<8x256xf32> -> vector<8x256xf32>
    %13 = arith.addf %8, %12 : vector<8x256xf32>
    %14 = tpu.iota {dimensions = array<i32: 1>} : vector<8x256xi32>
    %c16_i32 = arith.constant 16 : i32
    %c0_i32 = arith.constant 0 : i32
    %15 = arith.cmpi eq, %c16_i32, %c0_i32 : i32
    %c1_i32 = arith.constant 1 : i32
    %16 = arith.select %15, %c1_i32, %c16_i32 : i32
    %17 = vector.broadcast %16 : i32 to vector<8x256xi32>
    %18 = arith.remsi %14, %17 : vector<8x256xi32>
    %c0_i32_10 = arith.constant 0 : i32
    %19 = vector.broadcast %c0_i32_10 : i32 to vector<8x256xi32>
    %20 = arith.cmpi ne, %18, %19 : vector<8x256xi32>
    %c0_i32_11 = arith.constant 0 : i32
    %21 = vector.broadcast %c0_i32_11 : i32 to vector<8x256xi32>
    %22 = arith.cmpi slt, %18, %21 : vector<8x256xi32>
    %c0_i32_12 = arith.constant 0 : i32
    %23 = arith.cmpi slt, %16, %c0_i32_12 : i32
    %24 = vector.broadcast %23 : i1 to vector<8x256xi1>
    %25 = vector.broadcast %24 : vector<8x256xi1> to vector<8x256xi1>
    %26 = arith.xori %22, %25 : vector<8x256xi1>
    %27 = arith.andi %26, %20 : vector<8x256xi1>
    %28 = vector.broadcast %16 : i32 to vector<8x256xi32>
    %29 = arith.addi %18, %28 : vector<8x256xi32>
    %30 = arith.select %27, %29, %18 : vector<8x256xi1>, vector<8x256xi32>
    %c14_i32 = arith.constant 14 : i32
    %31 = vector.broadcast %c14_i32 : i32 to vector<8x256xi32>
    %32 = arith.cmpi slt, %30, %31 : vector<8x256xi32>
    %cst_13 = arith.constant 0.000000e+00 : f32
    %33 = vector.broadcast %cst_13 : f32 to vector<8x256xf32>
    %34 = arith.select %32, %13, %33 : vector<8x256xi1>, vector<8x256xf32>
    %c0_14 = arith.constant 0 : index
    %c0_15 = arith.constant 0 : index
    %35 = vector.load %arg3[%c0_14, %c0_15] : memref<8x256xf32, #tpu.memory_space<vmem>>, vector<8x256xf32>
    tpu.vector_store %arg3[%c0_14, %c0_15], %34 {strides = array<i32>} : memref<8x256xf32, #tpu.memory_space<vmem>>, vector<8x256xf32>,
    %cst_16 = arith.constant dense<0.000000e+00> : vector<8xf32>
    %36 = vector.multi_reduction <add>, %34, %cst_16 [1] : vector<8x256xf32> to vector<8xf32>
    %37 = vector.shape_cast %36 : vector<8xf32> to vector<8x1xf32>
    %38 = vector.shape_cast %37 : vector<8x1xf32> to vector<1x8x1xf32>
    %c0_17 = arith.constant 0 : index
    %c0_18 = arith.constant 0 : index
    %c0_19 = arith.constant 0 : index
    %39 = vector.load %arg4[%c0_17, %c0_18, %c0_19] : memref<1x8x1xf32, #tpu.memory_space<vmem>>, vector<1x8x1xf32>
    tpu.vector_store %arg4[%c0_17, %c0_18, %c0_19], %38 {strides = array<i32>} : memref<1x8x1xf32, #tpu.memory_space<vmem>>, vector<1x8x1xf32>,
    %40 = arith.mulf %34, %34 : vector<8x256xf32>
    %cst_20 = arith.constant dense<0.000000e+00> : vector<8xf32>
    %41 = vector.multi_reduction <add>, %40, %cst_20 [1] : vector<8x256xf32> to vector<8xf32>
    %42 = vector.shape_cast %41 : vector<8xf32> to vector<8x1xf32>
    %43 = vector.shape_cast %42 : vector<8x1xf32> to vector<1x8x1xf32>
    %c0_21 = arith.constant 0 : index
    %c0_22 = arith.constant 0 : index
    %c0_23 = arith.constant 0 : index
    %44 = vector.load %arg5[%c0_21, %c0_22, %c0_23] : memref<1x8x1xf32, #tpu.memory_space<vmem>>, vector<1x8x1xf32>
    tpu.vector_store %arg5[%c0_21, %c0_22, %c0_23], %43 {strides = array<i32>} : memref<1x8x1xf32, #tpu.memory_space<vmem>>, vector<1x8x1xf32>,
    return
  }
  func.func @transform_0(%arg0: i32) -> (i32, i32) {
    %c0_i32 = arith.constant 0 : i32
    %c0_i32_0 = arith.constant 0 : i32
    return %c0_i32, %arg0 : i32, i32
  }
  func.func @transform_1(%arg0: i32) -> (i32, i32, i32) {
    %c0_i32 = arith.constant 0 : i32
    %c0_i32_0 = arith.constant 0 : i32
    %c0_i32_1 = arith.constant 0 : i32
    %c0_i32_2 = arith.constant 0 : i32
    return %c0_i32, %c0_i32_0, %c0_i32_1 : i32, i32, i32
  }
  func.func @transform_2(%arg0: i32) -> (i32, i32) {
    %c0_i32 = arith.constant 0 : i32
    %c0_i32_0 = arith.constant 0 : i32
    return %c0_i32, %arg0 : i32, i32
  }
  func.func @transform_3(%arg0: i32) -> (i32, i32, i32) {
    %c0_i32 = arith.constant 0 : i32
    %c0_i32_0 = arith.constant 0 : i32
    %c0_i32_1 = arith.constant 0 : i32
    return %arg0, %c0_i32, %c0_i32_0 : i32, i32, i32
  }
  func.func @transform_4(%arg0: i32) -> (i32, i32, i32) {
    %c0_i32 = arith.constant 0 : i32
    %c0_i32_0 = arith.constant 0 : i32
    %c0_i32_1 = arith.constant 0 : i32
    return %arg0, %c0_i32, %c0_i32_0 : i32, i32, i32
  }
}

module attributes {stable_mosaic.version = 11 : i64} {
  func.func @_bn_relu_conv_stats_kernel(%arg0: i32, %arg1: memref<8x256xf32, #tpu.memory_space<vmem>>, %arg2: memref<8x1xf32, #tpu.memory_space<vmem>>, %arg3: memref<8x1xf32, #tpu.memory_space<vmem>>, %arg4: memref<3x8x8xf32, #tpu.memory_space<vmem>>, %arg5: memref<8x256xf32, #tpu.memory_space<vmem>>, %arg6: memref<1x8x1xf32, #tpu.memory_space<vmem>>, %arg7: memref<1x8x1xf32, #tpu.memory_space<vmem>>) attributes {dimension_semantics = [#tpu.dimension_semantics<parallel>], iteration_bounds = array<i64: 2>, scalar_prefetch = 0 : i64, scratch_operands = 0 : i64, tpu.core_type = #tpu.core_type<tc>, window_params = [{transform_indices = @transform_0, window_bounds = array<i64: 8, 256>}, {pipeline_mode = #tpu.pipeline_mode<synchronous>, transform_indices = @transform_1, window_bounds = array<i64: 8, 1>}, {pipeline_mode = #tpu.pipeline_mode<synchronous>, transform_indices = @transform_2, window_bounds = array<i64: 8, 1>}, {pipeline_mode = #tpu.pipeline_mode<synchronous>, transform_indices = @transform_3, window_bounds = array<i64: 3, 8, 8>}, {transform_indices = @transform_4, window_bounds = array<i64: 8, 256>}, {transform_indices = @transform_5, window_bounds = array<i64: 1, 8, 1>}, {transform_indices = @transform_6, window_bounds = array<i64: 1, 8, 1>}]} {
    %c0 = arith.constant 0 : index
    %c0_0 = arith.constant 0 : index
    %0 = vector.load %arg1[%c0, %c0_0] : memref<8x256xf32, #tpu.memory_space<vmem>>, vector<8x256xf32>
    %c0_1 = arith.constant 0 : index
    %c0_2 = arith.constant 0 : index
    %1 = vector.load %arg2[%c0_1, %c0_2] : memref<8x1xf32, #tpu.memory_space<vmem>>, vector<8x1xf32>
    %2 = vector.broadcast %1 : vector<8x1xf32> to vector<8x256xf32>
    %3 = arith.mulf %0, %2 : vector<8x256xf32>
    %c0_3 = arith.constant 0 : index
    %c0_4 = arith.constant 0 : index
    %4 = vector.load %arg3[%c0_3, %c0_4] : memref<8x1xf32, #tpu.memory_space<vmem>>, vector<8x1xf32>
    %5 = vector.broadcast %4 : vector<8x1xf32> to vector<8x256xf32>
    %6 = arith.addf %3, %5 : vector<8x256xf32>
    %cst = arith.constant 0.000000e+00 : f32
    %7 = vector.broadcast %cst : f32 to vector<8x256xf32>
    %8 = arith.maximumf %6, %7 : vector<8x256xf32>
    %c0_5 = arith.constant 0 : index
    %c0_6 = arith.constant 0 : index
    %c0_7 = arith.constant 0 : index
    %9 = vector.load %arg4[%c0_5, %c0_6, %c0_7] : memref<3x8x8xf32, #tpu.memory_space<vmem>>, vector<1x8x8xf32>
    %10 = vector.shape_cast %9 : vector<1x8x8xf32> to vector<8x8xf32>
    %cst_8 = arith.constant dense<0.000000e+00> : vector<8x256xf32>
    %11 = tpu.matmul %10, %8, %cst_8 {dimension_numbers = #tpu.dot_dimension_numbers<[1], [0], [0], [1], [0, 0, 1, 1], [], []>} : vector<8x8xf32>, vector<8x256xf32>, vector<8x256xf32> -> vector<8x256xf32>
    %c255_i32 = arith.constant 255 : i32
    %12 = tpu.dynamic_rotate %8 by %c255_i32 dim 1 : vector<8x256xf32>, i32 -> vector<8x256xf32>
    %c1 = arith.constant 1 : index
    %c0_9 = arith.constant 0 : index
    %c0_10 = arith.constant 0 : index
    %13 = vector.load %arg4[%c1, %c0_9, %c0_10] : memref<3x8x8xf32, #tpu.memory_space<vmem>>, vector<1x8x8xf32>
    %14 = vector.shape_cast %13 : vector<1x8x8xf32> to vector<8x8xf32>
    %cst_11 = arith.constant dense<0.000000e+00> : vector<8x256xf32>
    %15 = tpu.matmul %14, %12, %cst_11 {dimension_numbers = #tpu.dot_dimension_numbers<[1], [0], [0], [1], [0, 0, 1, 1], [], []>} : vector<8x8xf32>, vector<8x256xf32>, vector<8x256xf32> -> vector<8x256xf32>
    %16 = arith.addf %11, %15 : vector<8x256xf32>
    %c254_i32 = arith.constant 254 : i32
    %17 = tpu.dynamic_rotate %8 by %c254_i32 dim 1 : vector<8x256xf32>, i32 -> vector<8x256xf32>
    %c2 = arith.constant 2 : index
    %c0_12 = arith.constant 0 : index
    %c0_13 = arith.constant 0 : index
    %18 = vector.load %arg4[%c2, %c0_12, %c0_13] : memref<3x8x8xf32, #tpu.memory_space<vmem>>, vector<1x8x8xf32>
    %19 = vector.shape_cast %18 : vector<1x8x8xf32> to vector<8x8xf32>
    %cst_14 = arith.constant dense<0.000000e+00> : vector<8x256xf32>
    %20 = tpu.matmul %19, %17, %cst_14 {dimension_numbers = #tpu.dot_dimension_numbers<[1], [0], [0], [1], [0, 0, 1, 1], [], []>} : vector<8x8xf32>, vector<8x256xf32>, vector<8x256xf32> -> vector<8x256xf32>
    %21 = arith.addf %16, %20 : vector<8x256xf32>
    %22 = tpu.iota {dimensions = array<i32: 1>} : vector<8x256xi32>
    %c16_i32 = arith.constant 16 : i32
    %c0_i32 = arith.constant 0 : i32
    %23 = arith.cmpi eq, %c16_i32, %c0_i32 : i32
    %c1_i32 = arith.constant 1 : i32
    %24 = arith.select %23, %c1_i32, %c16_i32 : i32
    %25 = vector.broadcast %24 : i32 to vector<8x256xi32>
    %26 = arith.remsi %22, %25 : vector<8x256xi32>
    %c0_i32_15 = arith.constant 0 : i32
    %27 = vector.broadcast %c0_i32_15 : i32 to vector<8x256xi32>
    %28 = arith.cmpi ne, %26, %27 : vector<8x256xi32>
    %c0_i32_16 = arith.constant 0 : i32
    %29 = vector.broadcast %c0_i32_16 : i32 to vector<8x256xi32>
    %30 = arith.cmpi slt, %26, %29 : vector<8x256xi32>
    %c0_i32_17 = arith.constant 0 : i32
    %31 = arith.cmpi slt, %24, %c0_i32_17 : i32
    %32 = vector.broadcast %31 : i1 to vector<8x256xi1>
    %33 = vector.broadcast %32 : vector<8x256xi1> to vector<8x256xi1>
    %34 = arith.xori %30, %33 : vector<8x256xi1>
    %35 = arith.andi %34, %28 : vector<8x256xi1>
    %36 = vector.broadcast %24 : i32 to vector<8x256xi32>
    %37 = arith.addi %26, %36 : vector<8x256xi32>
    %38 = arith.select %35, %37, %26 : vector<8x256xi1>, vector<8x256xi32>
    %c12_i32 = arith.constant 12 : i32
    %39 = vector.broadcast %c12_i32 : i32 to vector<8x256xi32>
    %40 = arith.cmpi slt, %38, %39 : vector<8x256xi32>
    %cst_18 = arith.constant 0.000000e+00 : f32
    %41 = vector.broadcast %cst_18 : f32 to vector<8x256xf32>
    %42 = arith.select %40, %21, %41 : vector<8x256xi1>, vector<8x256xf32>
    %c0_19 = arith.constant 0 : index
    %c0_20 = arith.constant 0 : index
    %43 = vector.load %arg5[%c0_19, %c0_20] : memref<8x256xf32, #tpu.memory_space<vmem>>, vector<8x256xf32>
    tpu.vector_store %arg5[%c0_19, %c0_20], %42 {strides = array<i32>} : memref<8x256xf32, #tpu.memory_space<vmem>>, vector<8x256xf32>,
    %cst_21 = arith.constant dense<0.000000e+00> : vector<8xf32>
    %44 = vector.multi_reduction <add>, %42, %cst_21 [1] : vector<8x256xf32> to vector<8xf32>
    %45 = vector.shape_cast %44 : vector<8xf32> to vector<8x1xf32>
    %46 = vector.shape_cast %45 : vector<8x1xf32> to vector<1x8x1xf32>
    %c0_22 = arith.constant 0 : index
    %c0_23 = arith.constant 0 : index
    %c0_24 = arith.constant 0 : index
    %47 = vector.load %arg6[%c0_22, %c0_23, %c0_24] : memref<1x8x1xf32, #tpu.memory_space<vmem>>, vector<1x8x1xf32>
    tpu.vector_store %arg6[%c0_22, %c0_23, %c0_24], %46 {strides = array<i32>} : memref<1x8x1xf32, #tpu.memory_space<vmem>>, vector<1x8x1xf32>,
    %48 = arith.mulf %42, %42 : vector<8x256xf32>
    %cst_25 = arith.constant dense<0.000000e+00> : vector<8xf32>
    %49 = vector.multi_reduction <add>, %48, %cst_25 [1] : vector<8x256xf32> to vector<8xf32>
    %50 = vector.shape_cast %49 : vector<8xf32> to vector<8x1xf32>
    %51 = vector.shape_cast %50 : vector<8x1xf32> to vector<1x8x1xf32>
    %c0_26 = arith.constant 0 : index
    %c0_27 = arith.constant 0 : index
    %c0_28 = arith.constant 0 : index
    %52 = vector.load %arg7[%c0_26, %c0_27, %c0_28] : memref<1x8x1xf32, #tpu.memory_space<vmem>>, vector<1x8x1xf32>
    tpu.vector_store %arg7[%c0_26, %c0_27, %c0_28], %51 {strides = array<i32>} : memref<1x8x1xf32, #tpu.memory_space<vmem>>, vector<1x8x1xf32>,
    return
  }
  func.func @transform_0(%arg0: i32) -> (i32, i32) {
    %c0_i32 = arith.constant 0 : i32
    %c0_i32_0 = arith.constant 0 : i32
    return %c0_i32, %arg0 : i32, i32
  }
  func.func @transform_1(%arg0: i32) -> (i32, i32) {
    %c0_i32 = arith.constant 0 : i32
    %c0_i32_0 = arith.constant 0 : i32
    %c0_i32_1 = arith.constant 0 : i32
    return %c0_i32, %c0_i32_0 : i32, i32
  }
  func.func @transform_2(%arg0: i32) -> (i32, i32) {
    %c0_i32 = arith.constant 0 : i32
    %c0_i32_0 = arith.constant 0 : i32
    %c0_i32_1 = arith.constant 0 : i32
    return %c0_i32, %c0_i32_0 : i32, i32
  }
  func.func @transform_3(%arg0: i32) -> (i32, i32, i32) {
    %c0_i32 = arith.constant 0 : i32
    %c0_i32_0 = arith.constant 0 : i32
    %c0_i32_1 = arith.constant 0 : i32
    %c0_i32_2 = arith.constant 0 : i32
    return %c0_i32, %c0_i32_0, %c0_i32_1 : i32, i32, i32
  }
  func.func @transform_4(%arg0: i32) -> (i32, i32) {
    %c0_i32 = arith.constant 0 : i32
    %c0_i32_0 = arith.constant 0 : i32
    return %c0_i32, %arg0 : i32, i32
  }
  func.func @transform_5(%arg0: i32) -> (i32, i32, i32) {
    %c0_i32 = arith.constant 0 : i32
    %c0_i32_0 = arith.constant 0 : i32
    %c0_i32_1 = arith.constant 0 : i32
    return %arg0, %c0_i32, %c0_i32_0 : i32, i32, i32
  }
  func.func @transform_6(%arg0: i32) -> (i32, i32, i32) {
    %c0_i32 = arith.constant 0 : i32
    %c0_i32_0 = arith.constant 0 : i32
    %c0_i32_1 = arith.constant 0 : i32
    return %arg0, %c0_i32, %c0_i32_0 : i32, i32, i32
  }
}

</mosaic_0001>

<bundles_post_ra>
// kernel: conv_block_pallas.3
= control target key start
LH: loop header
LB: loop body
LE: loop exit
PB: predicated region body
PF: predicated region fallthrough
CT: control target
= control target key end

     0   :  { %s698_s21 = smov 0   ;;  %s754_s0 = inlined_call_operand.vmem [shape: f32[8,512], index: 0, kind: input, shape index: {}]   ;;  %s755_s1 = inlined_call_operand.vmem [shape: f32[8,1], index: 1, kind: input, shape index: {}]   ;;  %s756_s2 = inlined_call_operand.vmem [shape: f32[8,1], index: 2, kind: input, shape index: {}]   ;;  %s757_s3 = inlined_call_operand.vmem [shape: f32[3,8,8], index: 3, kind: input, shape index: {}]   ;;  %s758_s4 = inlined_call_operand.vmem [shape: f32[8,512], index: 4, kind: output, shape index: {0}]   ;;  %s759_s5 = inlined_call_operand.vmem [shape: f32[2,8,1], index: 5, kind: output, shape index: {1}]   ;;  %s760_s6 = inlined_call_operand.vmem [shape: f32[2,8,1], index: 6, kind: output, shape index: {2}]  }
   0x1 LB: > { %s704_s22 = sadd.s32 4294967295, %s658_s21   ;;  %p613_p0 = scmp.ge.s32.totalorder %s658_s21, 1  ;;  %s658_s21 = sphi %s698_s21, %s17_s21  }
   0x2   : > { %p218_p1 = scmp.lt.s32.totalorder %s658_s21, 3 }
   0x4   : > { %p219_p2 = pnand %p613_p0, %p218_p1 }
   0x5   : > { %s614_s27 = sshll.u32 (!%p219_p2), %s704_s22, 1  ;;  %s661_s8 = smov (!%p219_p2), 127  }
   0x6   : > { %222 = sbr.rel (%p219_p2) target bundleno = 525 (0x20d), region = 36  ;;  %p257_p3 = scmp.lt.s32.totalorder (!%p219_p2), %s614_s27, 3 }
   0x7   : > { %s662_s9 = smov (!%p219_p2), 126   ;;  %p268_p4 = scmp.lt.s32.totalorder (!%p219_p2), %s704_s22, 1 }
   0xb   : > { %v278_v0 = vld [vmem:[%s755_s1] sm:$0xff]  ;;  %v660_v1 = vmov 0   ;;  %s762_s27 = smov (!%p257_p3, %s614_s27), 3  ;;  %vm308_vm0 = vcmask 64512   ;;  %v301_v15 = vlaneseq  ;;  %v620_v20 = vld [vmem:[%s757_s3 + $0x8] sm:$0xff]  ;;  %v625_v26 = vld [vmem:[%s757_s3 + $0x10] sm:$0xff] }
   0xc   : > { %641 = vset.pattern.permute.xlu0 %v660_v1  ;;  %v286_v2 = vld [vmem:[%s756_s2] sm:$0xff]  ;;  %s615_s28 = sshll.u32 %s762_s27, 3  ;;  %s764_s22 = smov (!%p268_p4, %s704_s22), 1  ;;  %vm483_vm5 = vcmask 7168  }
   0xd   : > { %281 = vperm.xlu0 %641, %v278_v0   ;;  %s260_s7 = scalar_lea.vmem %s754_s0, %s615_s28  ;;  %v296_v14 = vld [vmem:[%s757_s3] sm:$0xff]  ;;  %v302_v16 = vand.u32 127, %v301_v15  ;;  %s266_s18 = scalar_lea.vmem %s758_s4, %s615_s28 }
   0xe   : > { %v276_v4 = vld [vmem:[%s260_s7] sm:$0xff]  ;;  %v277_v5 = vld [vmem:[%s260_s7 + $0x8] sm:$0xff]  ;;  %s618_s19 = sshll.u32 %s764_s22, 3 }
   0xf   : > { %vm303_vm1 = vcmp.lt.s32.totalorder %v302_v16, 127  ;;  %vm399_vm2 = vcmp.lt.s32.totalorder %v302_v16, 126  ;;  %v449_v31 = vadd.s32 128, %v302_v16  ;;  %v454_v34 = vand.u32 15, %v302_v16  ;;  %s271_s24 = scalar_lea.vmem %s759_s5, %s618_s19  ;;  %s275_s27 = scalar_lea.vmem %s760_s6, %s618_s19 }
  0x11   : > { %v461_v35 = vand.u32 15, %v449_v31  ;;  %vm474_vm3 = vcmp.lt.s32.totalorder %v454_v34, 12 }
  0x13   : > { %vm475_vm4 = vcmp.lt.s32.totalorder %v461_v35, 12 }
  0x15   : > { %289 = vperm.xlu0 %641, %v286_v2  }
  0x7f   : > { %v282_v3 = vpop.permute.xlu0 %281 }
  0x80   : > { %v284_v6 = vmul.f32 %v282_v3, %v276_v4  ;;  %v285_v7 = vmul.f32 %v282_v3, %v277_v5 }
  0x87   : > { %v290_v8 = vpop.permute.xlu0 %289 }
  0x88   : > { %v292_v9 = vadd.f32 %v290_v8, %v284_v6  ;;  %v293_v10 = vadd.f32 %v290_v8, %v285_v7 }
  0x8a   : > { %v294_v11 = vmax.f32 %v292_v9, 0.0  ;;  %v295_v12 = vmax.f32 %v293_v10, 0.0 }
  0x8c   : > { %370 = vmatpush.msra.mxu2 %v294_v11  ;;  %390 = vmatpush.msra.mxu3 %v295_v12  ;;  %v642_v13 = vpack.i.bf16 %v295_v12, %v294_v11 }
  0x8d   : > { %623 = vmatmul.msk.f32.vlgmr.msra.gmra.mxu2 %vm308_vm0, %v296_v14  ;;  %624 = vmatmul.msk.f32.vlgmr.msra.gmra.mxu3 %vm308_vm0, %v296_v14 }
  0x8e   : > { %643 = vrot.lane.b32.xlu1 %v642_v13, %s661_s8 }
  0x96   : > { %648 = vrot.lane.b32.xlu1 %v642_v13, %s662_s9 }
 0x100   : > { %v644_v17 = vpop.permute.xlu1 %643 }
 0x101   : > { %v646_v18 = vunpack.i.h.bf16 %v644_v17  ;;  %v645_v19 = vunpack.i.l.bf16 %v644_v17 }
 0x103   : > { %v304_v21 = vsel %vm303_vm1, %v645_v19, %v646_v18  ;;  %v305_v22 = vsel %vm303_vm1, %v646_v18, %v645_v19 }
 0x104   : > { %327 = vmatpush.msra.mxu0 %v304_v21  ;;  %347 = vmatpush.msra.mxu1 %v305_v22 }
 0x105   : > { %621 = vmatmul.msk.f32.vlgmr.msra.gmra.mxu0 %vm308_vm0, %v620_v20  ;;  %622 = vmatmul.msk.f32.vlgmr.msra.gmra.mxu1 %vm308_vm0, %v620_v20 }
 0x108   : > { %v649_v23 = vpop.permute.xlu1 %648 }
 0x109   : > { %v651_v24 = vunpack.i.h.bf16 %v649_v23  ;;  %v650_v25 = vunpack.i.l.bf16 %v649_v23 }
 0x10b   : > { %v400_v27 = vsel %vm399_vm2, %v650_v25, %v651_v24  ;;  %v401_v28 = vsel %vm399_vm2, %v651_v24, %v650_v25 }
 0x10c   : > { %422 = vmatpush.msrb.mxu0 %v400_v27  ;;  %442 = vmatpush.msrb.mxu1 %v401_v28 }
 0x10d   : > { %626 = vmatmul.msk.f32.vlgmr.msrb.gmra.mxu0 %vm308_vm0, %v625_v26  ;;  %627 = vmatmul.msk.f32.vlgmr.msrb.gmra.mxu1 %vm308_vm0, %v625_v26 }
 0x110   : > { %v372_v32 = vpop.f32.mrf.mxu2  ;;  %v392_v33 = vpop.f32.mrf.mxu3 }
 0x182   : > { %v329_v29 = vpop.f32.mrf.mxu0  ;;  %v349_v30 = vpop.f32.mrf.mxu1 }
 0x183   : > { %v373_v36 = vadd.f32 %v372_v32, %v329_v29  ;;  %v393_v37 = vadd.f32 %v392_v33, %v349_v30 }
 0x18a   : > { %v424_v38 = vpop.f32.mrf.mxu0  ;;  %v444_v39 = vpop.f32.mrf.mxu1 }
 0x18b   : > { %v447_v40 = vadd.f32 %v424_v38, %v373_v36  ;;  %v448_v41 = vadd.f32 %v444_v39, %v393_v37 }
 0x18d   : > { %v476_v42 = vsel %vm474_vm3, %v447_v40, 0.0  ;;  %v477_v43 = vsel %vm475_vm4, %v448_v41, 0.0 }
 0x18e   : > { %v480_v44 = vadd.f32 %v477_v43, %v476_v42  ;;  %478 = vst [vmem:[%s266_s18] sm:$0xff] %v476_v42  ;;  %v485_v45 = vmul.f32 %v476_v42, %v476_v42  ;;  %v486_v46 = vmul.f32 %v477_v43, %v477_v43 }
 0x18f   : > { %479 = vst [vmem:[%s266_s18 + $0x8] sm:$0xff] %v477_v43 }
 0x190   : > { %481 = vadd.xlane.f32.xlu2 %v480_v44  ;;  %v487_v47 = vadd.f32 %v486_v46, %v485_v45 }
 0x198   : > { %488 = vadd.xlane.f32.xlu2 %v487_v47 }
 0x203   : > { %v482_v48 = vpop.xlane.xlu2 %481 }
 0x204   : > { %484 = vst.msk [vmem:[%s271_s24] sm:$0xff] %vm483_vm5, %v482_v48 }
 0x20b   : > { %v489_v49 = vpop.xlane.xlu2 %488 }
 0x20c   : > { %490 = vst.msk [vmem:[%s275_s27] sm:$0xff] %vm483_vm5, %v489_v49 }
 0x20d PF: > { %s17_s21 = sadd.s32 1, %s658_s21  }
 0x20e   : > { %p14_p5 = scmp.ge.s32.totalorder %s17_s21, 4  }
 0x210   :  { %16 = sbr.rel (!%p14_p5) target bundleno = 1 (0x1), region = 92 }

// kernel: conv_block_pallas.2
= control target key start
LH: loop header
LB: loop body
LE: loop exit
PB: predicated region body
PF: predicated region fallthrough
CT: control target
= control target key end

     0   :  { %s639_s15 = smov 0   ;;  %s692_s0 = inlined_call_operand.vmem [shape: f32[4,512], index: 0, kind: input, shape index: {}]   ;;  %s693_s1 = inlined_call_operand.vmem [shape: f32[3,8,4], index: 1, kind: input, shape index: {}]   ;;  %s694_s2 = inlined_call_operand.vmem [shape: f32[8,512], index: 2, kind: output, shape index: {0}]   ;;  %s695_s3 = inlined_call_operand.vmem [shape: f32[2,8,1], index: 3, kind: output, shape index: {1}]   ;;  %s696_s4 = inlined_call_operand.vmem [shape: f32[2,8,1], index: 4, kind: output, shape index: {2}]  }
   0x1 LB: > { %s645_s16 = sadd.s32 4294967295, %s610_s15   ;;  %p571_p0 = scmp.ge.s32.totalorder %s610_s15, 1  ;;  %s610_s15 = sphi %s639_s15, %s15_s15  }
   0x2   : > { %p168_p1 = scmp.lt.s32.totalorder %s610_s15, 3 }
   0x4   : > { %p169_p2 = pnand %p571_p0, %p168_p1 }
   0x5   : > { %s572_s17 = sshll.u32 (!%p169_p2), %s645_s16, 1  ;;  %s612_s22 = smov (!%p169_p2), 127  }
   0x6   : > { %172 = sbr.rel (%p169_p2) target bundleno = 420 (0x1a4), region = 28  ;;  %p203_p3 = scmp.lt.s32.totalorder (!%p169_p2), %s572_s17, 3 }
   0x7   : > { %s613_s23 = smov (!%p169_p2), 126   ;;  %p214_p4 = scmp.lt.s32.totalorder (!%p169_p2), %s645_s16, 1 }
   0xb   : > { %s698_s17 = smov (!%p203_p3, %s572_s17), 3  ;;  %vm245_vm0 = vcmask 1043456   ;;  %vm241_vm1 = vcmask 31744   ;;  %v223_v7 = vld [vmem:[%s693_s1] sm:$0xff]  ;;  %v234_v8 = vlaneseq  ;;  %v578_v12 = vld [vmem:[%s693_s1 + $0x8] sm:$0xff]  ;;  %v587_v17 = vld [vmem:[%s693_s1 + $0x10] sm:$0xff] }
   0xc   : > { %s573_s18 = sshll.u32 %s698_s17, 2  ;;  %s575_s30 = sshll.u32 %s698_s17, 3  ;;  %vm441_vm6 = vcmask 7168  }
   0xd   : > { %s206_s21 = scalar_lea.vmem %s692_s0, %s573_s18  ;;  %v235_v10 = vand.u32 127, %v234_v8  ;;  %s212_s7 = scalar_lea.vmem %s694_s2, %s575_s30 }
   0xe   : > { %v222_v0 = vld [vmem:[%s206_s21] sm:$0xff]  ;;  %s700_s16 = smov (!%p214_p4, %s645_s16), 1 }
   0xf   : > { %225 = vst [vmem:[#allocation1] ss:$2 sm:$0xff] %v222_v0  ;;  %vm236_vm2 = vcmp.lt.s32.totalorder %v235_v10, 127  ;;  %vm351_vm3 = vcmp.lt.s32.totalorder %v235_v10, 126  ;;  %v407_v22 = vadd.s32 128, %v235_v10  ;;  %v412_v25 = vand.u32 15, %v235_v10 }
  0x10   : > { %s576_s8 = sshll.u32 %s700_s16, 3 }
  0x11   : > { %v419_v26 = vand.u32 15, %v407_v22  ;;  %vm432_vm4 = vcmp.lt.s32.totalorder %v412_v25, 14  ;;  %s217_s11 = scalar_lea.vmem %s695_s3, %s576_s8  ;;  %s221_s14 = scalar_lea.vmem %s696_s4, %s576_s8 }
  0x13   : > { %vm433_vm5 = vcmp.lt.s32.totalorder %v419_v26, 14 }
  0x16   : > { %v226_v1 = vld.sshfl [vmem:[#allocation1] sm:$0xff pattern:$0x75316420]  ;;  %v227_v2 = vld.sshfl [vmem:[#allocation1 + $0x8] sm:$0xff pattern:$0x75316420] }
  0x17   : > { %230 = vrot.lane.b32.xlu0 %v226_v1, %s612_s22  ;;  %292 = vst [vmem:[#allocation1] ss:$2 sm:$0xff] %v222_v0 }
  0x1e   : > { %v293_v3 = vld.sshfl [vmem:[#allocation1] sm:$0xff pattern:$0x75316420]  ;;  %v294_v4 = vld.sshfl [vmem:[#allocation1 + $0x8] sm:$0xff pattern:$0x75316420] }
  0x1f   : > { %232 = vrot.lane.b32.xlu0 %v227_v2, %s612_s22  ;;  %342 = vst [vmem:[#allocation1] ss:$2 sm:$0xff] %v222_v0  ;;  %583 = vmatpush.msk.msra.mxu2 %vm245_vm0, %v293_v3 }
  0x20   : > { %585 = vmatpush.msk.msra.mxu3 %vm245_vm0, %v294_v4  ;;  %584 = vmatmul.msk.f32.vlgmr.msra.gmra.mxu2 %vm241_vm1, %v223_v7 }
  0x21   : > { %586 = vmatmul.msk.f32.vlgmr.msra.gmra.mxu3 %vm241_vm1, %v223_v7 }
  0x26   : > { %v343_v5 = vld.sshfl [vmem:[#allocation1] sm:$0xff pattern:$0x75316420]  ;;  %v344_v6 = vld.sshfl [vmem:[#allocation1 + $0x8] sm:$0xff pattern:$0x75316420] }
  0x27   : > { %347 = vrot.lane.b32.xlu1 %v343_v5, %s613_s23 }
  0x2f   : > { %349 = vrot.lane.b32.xlu1 %v344_v6, %s613_s23 }
  0x89   : > { %v231_v9 = vpop.permute.xlu0 %230 }
  0x91   : > { %v233_v11 = vpop.permute.xlu0 %232 }
  0x92   : > { %v237_v13 = vsel %vm236_vm2, %v231_v9, %v233_v11  ;;  %v238_v14 = vsel %vm236_vm2, %v233_v11, %v231_v9 }
  0x93   : > { %579 = vmatpush.msk.msra.mxu0 %vm245_vm0, %v237_v13  ;;  %581 = vmatpush.msk.msra.mxu1 %vm245_vm0, %v238_v14 }
  0x94   : > { %580 = vmatmul.msk.f32.vlgmr.msra.gmra.mxu0 %vm241_vm1, %v578_v12  ;;  %582 = vmatmul.msk.f32.vlgmr.msra.gmra.mxu1 %vm241_vm1, %v578_v12 }
  0x99   : > { %v348_v15 = vpop.permute.xlu1 %347 }
  0xa1   : > { %v350_v16 = vpop.permute.xlu1 %349 }
  0xa2   : > { %v352_v18 = vsel %vm351_vm3, %v348_v15, %v350_v16  ;;  %v353_v19 = vsel %vm351_vm3, %v350_v16, %v348_v15 }
  0xa3   : > { %588 = vmatpush.msk.msrb.mxu0 %vm245_vm0, %v352_v18  ;;  %590 = vmatpush.msk.msrb.mxu1 %vm245_vm0, %v353_v19  ;;  %v319_v23 = vpop.f32.mrf.mxu2 }
  0xa4   : > { %589 = vmatmul.msk.f32.vlgmr.msrb.gmra.mxu0 %vm241_vm1, %v587_v17  ;;  %591 = vmatmul.msk.f32.vlgmr.msrb.gmra.mxu1 %vm241_vm1, %v587_v17  ;;  %v339_v24 = vpop.f32.mrf.mxu3 }
 0x111   : > { %v269_v20 = vpop.f32.mrf.mxu0  ;;  %v289_v21 = vpop.f32.mrf.mxu1 }
 0x112   : > { %v320_v27 = vadd.f32 %v319_v23, %v269_v20  ;;  %v340_v28 = vadd.f32 %v339_v24, %v289_v21 }
 0x121   : > { %v382_v29 = vpop.f32.mrf.mxu0  ;;  %v402_v30 = vpop.f32.mrf.mxu1 }
 0x122   : > { %v405_v31 = vadd.f32 %v382_v29, %v320_v27  ;;  %v406_v32 = vadd.f32 %v402_v30, %v340_v28 }
 0x124   : > { %v434_v33 = vsel %vm432_vm4, %v405_v31, 0.0  ;;  %v435_v34 = vsel %vm433_vm5, %v406_v32, 0.0 }
 0x125   : > { %v438_v35 = vadd.f32 %v435_v34, %v434_v33  ;;  %436 = vst [vmem:[%s212_s7] sm:$0xff] %v434_v33  ;;  %v443_v36 = vmul.f32 %v434_v33, %v434_v33  ;;  %v444_v37 = vmul.f32 %v435_v34, %v435_v34 }
 0x126   : > { %437 = vst [vmem:[%s212_s7 + $0x8] sm:$0xff] %v435_v34 }
 0x127   : > { %439 = vadd.xlane.f32.xlu2 %v438_v35  ;;  %v445_v38 = vadd.f32 %v444_v37, %v443_v36 }
 0x12f   : > { %446 = vadd.xlane.f32.xlu2 %v445_v38 }
 0x19a   : > { %v440_v39 = vpop.xlane.xlu2 %439 }
 0x19b   : > { %442 = vst.msk [vmem:[%s217_s11] sm:$0xff] %vm441_vm6, %v440_v39 }
 0x1a2   : > { %v447_v40 = vpop.xlane.xlu2 %446 }
 0x1a3   : > { %448 = vst.msk [vmem:[%s221_s14] sm:$0xff] %vm441_vm6, %v447_v40 }
 0x1a4 PF: > { %s15_s15 = sadd.s32 1, %s610_s15  }
 0x1a5   : > { %p12_p5 = scmp.ge.s32.totalorder %s15_s15, 4  }
 0x1a7   :  { %14 = sbr.rel (!%p12_p5) target bundleno = 1 (0x1), region = 84 }

</bundles_post_ra>
